<compile_context>
chip_gen: v7x
topology: tpu7x:2x2x1
jax: 0.10.0
libtpu: 0.0.40
codegen_flags: <defaults>
</compile_context>

<pallas_src>
import functools

import jax
import jax.numpy as jnp
from jax.experimental import pallas as pl
from jax.experimental.pallas import tpu as pltpu


EMB = 25          # vision embedding size == fc in_features
EMB_PAD = 128     # lane-padded embedding width (zero pad is numerically exact)
LANE = 128
SUBLANE = 8


def _round_up(x, m):
    return ((x + m - 1) // m) * m


def sender_kernel(x_ref, wv_ref, bv_ref, wf_ref, bf_ref, out_ref):
    # x_ref : (TB, D)          f32   flattened image tile (streamed)
    # wv_ref: (D, 128)         bf16  vision "embedd" weight (transposed, zero-padded)
    # bv_ref: (1, 128)         f32   vision bias (zero-padded)
    # wf_ref: (128, n_hidden)  bf16  fc weight (transposed, zero-padded rows)
    # bf_ref: (1, n_hidden)    f32   fc bias
    # out_ref: (TB, n_hidden)  f32
    x_bf = x_ref[...].astype(jnp.bfloat16)        # in-kernel VPU cast, no extra HBM pass
    # --- vision.embedd (torch.no_grad -> forward value identical) ---
    emb = jnp.dot(x_bf, wv_ref[...], preferred_element_type=jnp.float32)
    emb = jnp.maximum(emb + bv_ref[...], 0.0)
    # --- self.fc : Linear(25, n_hidden) ---
    out = jnp.dot(emb.astype(jnp.bfloat16), wf_ref[...],
                  preferred_element_type=jnp.float32)
    out_ref[...] = (out + bf_ref[...]).astype(out_ref.dtype)


def _choose_tb(B, D, n_hidden, tb_max, stream_budget_bytes):
    # Double-buffered f32 x tile + f32 out tile; account for VMEM (8,128) layout pad.
    d_vmem = _round_up(D, LANE)
    h_vmem = _round_up(n_hidden, LANE)
    per_row = 2 * d_vmem * 4 + 2 * h_vmem * 4
    tb = max(SUBLANE, (stream_budget_bytes // per_row) // SUBLANE * SUBLANE)
    tb = min(tb, tb_max)
    # Aim for >= 2 balanced grid steps so both v7x TensorCores get work.
    half = max(SUBLANE, _round_up(-(-B // 2), SUBLANE))
    tb = min(tb, half)
    if tb >= B:
        tb = B  # single full-batch block; block dim == array dim is always legal
    return tb


@functools.partial(jax.jit, static_argnames=("tb_max",))
def sender_forward(x_nchw, wv, bv, wf, bf, *, tb_max=4096):
    """x_nchw: (B, C, H, W) f32.  wv: (D, 25), bv: (25,), wf: (25, n_hidden),
    bf: (n_hidden,).  Returns (B, n_hidden) f32."""
    B = x_nchw.shape[0]
    D = wv.shape[0]
    n_hidden = wf.shape[1]

    # Flatten only (free for contiguous NCHW). No dtype convert here.
    x_flat = x_nchw.reshape(B, -1)

    tb = _choose_tb(B, D, n_hidden, tb_max, stream_budget_bytes=36 * 1024 * 1024)
    grid = (pl.cdiv(B, tb),)

    # Zero-pad weights/biases to lane-dense shapes (numerically exact:
    # zero columns / zero rows contribute nothing, relu(0) = 0).
    wv_p = jnp.zeros((D, EMB_PAD), jnp.bfloat16).at[:, :EMB].set(
        wv.astype(jnp.bfloat16))
    bv_p = jnp.zeros((1, EMB_PAD), jnp.float32).at[0, :EMB].set(
        bv.astype(jnp.float32))
    wf_p = jnp.zeros((EMB_PAD, n_hidden), jnp.bfloat16).at[:EMB, :].set(
        wf.astype(jnp.bfloat16))
    bf_p = bf.astype(jnp.float32).reshape(1, n_hidden)

    cost = pl.CostEstimate(
        flops=2 * B * D * EMB_PAD + 2 * B * EMB_PAD * n_hidden,
        transcendentals=0,
        bytes_accessed=(B * D * 4                 # x (f32, streamed)
                        + D * EMB_PAD * 2         # wv (bf16)
                        + EMB_PAD * 4             # bv
                        + EMB_PAD * n_hidden * 2  # wf (bf16)
                        + n_hidden * 4            # bf
                        + B * n_hidden * 4),      # output (unpadded f32)
    )

    return pl.pallas_call(
        sender_kernel,
        out_shape=jax.ShapeDtypeStruct((B, n_hidden), jnp.float32),
        grid_spec=pltpu.PrefetchScalarGridSpec(
            num_scalar_prefetch=0,
            grid=grid,
            in_specs=[
                pl.BlockSpec((tb, D), lambda i: (i, 0)),              # x: streamed
                pl.BlockSpec((D, EMB_PAD), lambda i: (0, 0)),         # wv: resident
                pl.BlockSpec((1, EMB_PAD), lambda i: (0, 0)),         # bv: resident
                pl.BlockSpec((EMB_PAD, n_hidden), lambda i: (0, 0)),  # wf: resident
                pl.BlockSpec((1, n_hidden), lambda i: (0, 0)),        # bf: resident
            ],
            out_specs=pl.BlockSpec((tb, n_hidden), lambda i: (i, 0)),
        ),
        compiler_params=pltpu.CompilerParams(
            dimension_semantics=("parallel",),   # batch axis shards across v7x's 2 TCs
            vmem_limit_bytes=48 * 1024 * 1024,   # < v7x 64 MiB physical, ample on v5e/v6e
        ),
        cost_estimate=cost,
    )(x_flat, wv_p, bv_p, wf_p, bf_p)


def reference_forward_f32(x_nchw, wv, bv, wf, bf):
    B = x_nchw.shape[0]
    x_flat = x_nchw.reshape(B, -1)
    emb = jnp.maximum(x_flat @ wv + bv, 0.0)
    return emb @ wf + bf


def reference_forward_bf16(x_nchw, wv, bv, wf, bf):
    # Same bf16-input / f32-accumulate numerics as the kernel (for a tight check).
    B = x_nchw.shape[0]
    x_flat = x_nchw.reshape(B, -1)
    emb = jnp.dot(x_flat.astype(jnp.bfloat16), wv.astype(jnp.bfloat16),
                  preferred_element_type=jnp.float32) + bv
    emb = jnp.maximum(emb, 0.0)
    return jnp.dot(emb.astype(jnp.bfloat16), wf.astype(jnp.bfloat16),
                   preferred_element_type=jnp.float32) + bf


if __name__ == "__main__":
    key = jax.random.PRNGKey(0)
    k_x, k_wv, k_bv, k_wf, k_bf = jax.random.split(key, 5)

    # Small shapes consistent with the module: fc input must be 25.
    B, C, H, W = 2, 3, 16, 16
    D = C * H * W            # 768
    N_HIDDEN = 32

    x = jax.random.normal(k_x, (B, C, H, W), dtype=jnp.float32)

    # Deterministic synthetic parameters (no checkpoint loading).
    wv = jax.random.normal(k_wv, (D, EMB), dtype=jnp.float32) * 0.05
    bv = jax.random.normal(k_bv, (EMB,), dtype=jnp.float32) * 0.05
    wf = jax.random.normal(k_wf, (EMB, N_HIDDEN), dtype=jnp.float32) * 0.2
    bf = jax.random.normal(k_bf, (N_HIDDEN,), dtype=jnp.float32) * 0.2

    out = jax.block_until_ready(sender_forward(x, wv, bv, wf, bf))
    assert out.shape == (B, N_HIDDEN) and out.dtype == jnp.float32

    ref16 = reference_forward_bf16(x, wv, bv, wf, bf)
    ref32 = reference_forward_f32(x, wv, bv, wf, bf)
    # Tight check against a reference with the same bf16/f32 numerics.
    assert jnp.allclose(out, ref16, atol=2e-2, rtol=2e-2), (
        float(jnp.max(jnp.abs(out - ref16))))
    # Documented accuracy tradeoff: bf16 matmul inputs vs the f32 torch reference.
    assert jnp.allclose(out, ref32, atol=1e-1, rtol=1e-1), (
        float(jnp.max(jnp.abs(out - ref32))))

    print("KERNEL_OK")
</pallas_src>

<mosaic_0001>
module attributes {stable_mosaic.version = 11 : i64} {
  func.func @sender_kernel(%arg0: i32, %arg1: memref<2x768xf32, #tpu.memory_space<vmem>>, %arg2: memref<768x128xbf16, #tpu.memory_space<vmem>>, %arg3: memref<1x128xf32, #tpu.memory_space<vmem>>, %arg4: memref<128x32xbf16, #tpu.memory_space<vmem>>, %arg5: memref<1x32xf32, #tpu.memory_space<vmem>>, %arg6: memref<2x32xf32, #tpu.memory_space<vmem>>) attributes {dimension_semantics = [#tpu.dimension_semantics<parallel>], iteration_bounds = array<i64: 1>, scalar_prefetch = 0 : i64, scratch_operands = 0 : i64, tpu.core_type = #tpu.core_type<tc>, window_params = [{transform_indices = @transform_0, window_bounds = array<i64: 2, 768>}, {pipeline_mode = #tpu.pipeline_mode<synchronous>, transform_indices = @transform_1, window_bounds = array<i64: 768, 128>}, {pipeline_mode = #tpu.pipeline_mode<synchronous>, transform_indices = @transform_2, window_bounds = array<i64: 1, 128>}, {pipeline_mode = #tpu.pipeline_mode<synchronous>, transform_indices = @transform_3, window_bounds = array<i64: 128, 32>}, {pipeline_mode = #tpu.pipeline_mode<synchronous>, transform_indices = @transform_4, window_bounds = array<i64: 1, 32>}, {transform_indices = @transform_5, window_bounds = array<i64: 2, 32>}]} {
    %c0 = arith.constant 0 : index
    %c0_0 = arith.constant 0 : index
    %0 = vector.load %arg1[%c0, %c0_0] : memref<2x768xf32, #tpu.memory_space<vmem>>, vector<2x768xf32>
    %1 = arith.truncf %0 : vector<2x768xf32> to vector<2x768xbf16>
    %c0_1 = arith.constant 0 : index
    %c0_2 = arith.constant 0 : index
    %2 = vector.load %arg2[%c0_1, %c0_2] : memref<768x128xbf16, #tpu.memory_space<vmem>>, vector<768x128xbf16>
    %cst = arith.constant dense<0.000000e+00> : vector<2x128xf32>
    %3 = tpu.matmul %1, %2, %cst {dimension_numbers = #tpu.dot_dimension_numbers<[1], [0], [0], [1], [0, 0, 1, 1], [], []>} : vector<2x768xbf16>, vector<768x128xbf16>, vector<2x128xf32> -> vector<2x128xf32>
    %c0_3 = arith.constant 0 : index
    %c0_4 = arith.constant 0 : index
    %4 = vector.load %arg3[%c0_3, %c0_4] : memref<1x128xf32, #tpu.memory_space<vmem>>, vector<1x128xf32>
    %5 = vector.broadcast %4 : vector<1x128xf32> to vector<2x128xf32>
    %6 = arith.addf %3, %5 : vector<2x128xf32>
    %cst_5 = arith.constant 0.000000e+00 : f32
    %7 = vector.broadcast %cst_5 : f32 to vector<2x128xf32>
    %8 = arith.maximumf %6, %7 : vector<2x128xf32>
    %9 = arith.truncf %8 : vector<2x128xf32> to vector<2x128xbf16>
    %c0_6 = arith.constant 0 : index
    %c0_7 = arith.constant 0 : index
    %10 = vector.load %arg4[%c0_6, %c0_7] : memref<128x32xbf16, #tpu.memory_space<vmem>>, vector<128x32xbf16>
    %cst_8 = arith.constant dense<0.000000e+00> : vector<2x32xf32>
    %11 = tpu.matmul %9, %10, %cst_8 {dimension_numbers = #tpu.dot_dimension_numbers<[1], [0], [0], [1], [0, 0, 1, 1], [], []>} : vector<2x128xbf16>, vector<128x32xbf16>, vector<2x32xf32> -> vector<2x32xf32>
    %c0_9 = arith.constant 0 : index
    %c0_10 = arith.constant 0 : index
    %12 = vector.load %arg5[%c0_9, %c0_10] : memref<1x32xf32, #tpu.memory_space<vmem>>, vector<1x32xf32>
    %13 = vector.broadcast %12 : vector<1x32xf32> to vector<2x32xf32>
    %14 = arith.addf %11, %13 : vector<2x32xf32>
    %c0_11 = arith.constant 0 : index
    %c0_12 = arith.constant 0 : index
    %15 = vector.load %arg6[%c0_11, %c0_12] : memref<2x32xf32, #tpu.memory_space<vmem>>, vector<2x32xf32>
    tpu.vector_store %arg6[%c0_11, %c0_12], %14 {strides = array<i32>} : memref<2x32xf32, #tpu.memory_space<vmem>>, vector<2x32xf32>,
    return
  }
  func.func @transform_0(%arg0: i32) -> (i32, i32) {
    %c0_i32 = arith.constant 0 : i32
    %c0_i32_0 = arith.constant 0 : i32
    return %arg0, %c0_i32 : i32, i32
  }
  func.func @transform_1(%arg0: i32) -> (i32, i32) {
    %c0_i32 = arith.constant 0 : i32
    %c0_i32_0 = arith.constant 0 : i32
    %c0_i32_1 = arith.constant 0 : i32
    return %c0_i32, %c0_i32_0 : i32, i32
  }
  func.func @transform_2(%arg0: i32) -> (i32, i32) {
    %c0_i32 = arith.constant 0 : i32
    %c0_i32_0 = arith.constant 0 : i32
    %c0_i32_1 = arith.constant 0 : i32
    return %c0_i32, %c0_i32_0 : i32, i32
  }
  func.func @transform_3(%arg0: i32) -> (i32, i32) {
    %c0_i32 = arith.constant 0 : i32
    %c0_i32_0 = arith.constant 0 : i32
    %c0_i32_1 = arith.constant 0 : i32
    return %c0_i32, %c0_i32_0 : i32, i32
  }
  func.func @transform_4(%arg0: i32) -> (i32, i32) {
    %c0_i32 = arith.constant 0 : i32
    %c0_i32_0 = arith.constant 0 : i32
    %c0_i32_1 = arith.constant 0 : i32
    return %c0_i32, %c0_i32_0 : i32, i32
  }
  func.func @transform_5(%arg0: i32) -> (i32, i32) {
    %c0_i32 = arith.constant 0 : i32
    %c0_i32_0 = arith.constant 0 : i32
    return %arg0, %c0_i32 : i32, i32
  }
}

</mosaic_0001>

<bundles_post_ra>
// kernel: sender_forward.1
= control target key start
LH: loop header
LB: loop body
LE: loop exit
PB: predicated region body
PF: predicated region fallthrough
CT: control target
= control target key end

     0   :  { %v30_v27 = vlaneseq  ;;  %v942_v35 = vmov 1983009808   ;;  %s1168_s0 = inlined_call_operand.vmem [shape: f32[2,768], index: 0, kind: input, shape index: {}]   ;;  %s1169_s1 = inlined_call_operand.vmem [shape: bf16[768,128], index: 1, kind: input, shape index: {}]   ;;  %s1170_s2 = inlined_call_operand.vmem [shape: f32[1,128], index: 2, kind: input, shape index: {}]   ;;  %s1171_s3 = inlined_call_operand.vmem [shape: bf16[128,32], index: 3, kind: input, shape index: {}]   ;;  %s1172_s4 = inlined_call_operand.vmem [shape: f32[1,32], index: 4, kind: input, shape index: {}]   ;;  %s1173_s5 = inlined_call_operand.hbm [shape: f32[2,32], index: 5, kind: output, shape index: {}]  }
   0x1   :  { %v861_v0 = vld [vmem:[%s1169_s1 + $0x40] sm:$0xff]   ;;  %v865_v4 = vld [vmem:[%s1169_s1 + $0x48] sm:$0xff]   ;;  %v869_v8 = vld [vmem:[%s1169_s1 + $0x50] sm:$0xff]   ;;  %v28_v36 = vunpack.c.l.s4 %v942_v35 }
   0x2   :  { %v862_v1 = vld [vmem:[%s1169_s1] sm:$0xff]   ;;  %762 = vmatprep.subr.bf16.mxu0 %v861_v0  ;;  %v866_v5 = vld [vmem:[%s1169_s1 + $0x8] sm:$0xff]   ;;  %v870_v9 = vld [vmem:[%s1169_s1 + $0x10] sm:$0xff]   ;;  %v31_v32 = vshrl.u32 %v30_v27, 7 }
   0x3   :  { %v863_v2 = vld [vmem:[%s1169_s1 + $0xc0] sm:$0xff]   ;;  %763 = vmatpush3.bf16.msra.mxu0 %v862_v1  ;;  %v867_v6 = vld [vmem:[%s1169_s1 + $0xc8] sm:$0xff]   ;;  %v871_v10 = vld [vmem:[%s1169_s1 + $0xd0] sm:$0xff]   ;;  %v29_v38 = vunpack.c.0.s8 %v28_v36 }
   0x4   :  { %v864_v3 = vld [vmem:[%s1169_s1 + $0x80] sm:$0xff]   ;;  %784 = vmatprep.subr.bf16.mxu1 %v863_v2  ;;  %764 = vmatprep.subr.bf16.mxu0 %v865_v4  ;;  %v868_v7 = vld [vmem:[%s1169_s1 + $0x88] sm:$0xff]   ;;  %v872_v11 = vld [vmem:[%s1169_s1 + $0x90] sm:$0xff]  }
   0x5   :  { %785 = vmatpush3.bf16.msra.mxu1 %v864_v3  ;;  %v873_v12 = vld [vmem:[%s1169_s1 + $0x58] sm:$0xff]   ;;  %v877_v16 = vld [vmem:[%s1169_s1 + $0x60] sm:$0xff]   ;;  %v881_v20 = vld [vmem:[%s1169_s1 + $0x68] sm:$0xff]   ;;  %v32_v40 = vsub.s32 %v29_v38, %v31_v32 }
   0x6   :  { %786 = vmatprep.subr.bf16.mxu1 %v867_v6  ;;  %v874_v13 = vld [vmem:[%s1169_s1 + $0x18] sm:$0xff]   ;;  %v878_v17 = vld [vmem:[%s1169_s1 + $0x20] sm:$0xff]   ;;  %v882_v21 = vld [vmem:[%s1169_s1 + $0x28] sm:$0xff]  }
   0x7   :  { %765 = vmatpush3.bf16.msra.mxu0 %v866_v5  ;;  %v875_v14 = vld [vmem:[%s1169_s1 + $0xd8] sm:$0xff]   ;;  %v879_v18 = vld [vmem:[%s1169_s1 + $0xe0] sm:$0xff]   ;;  %v883_v22 = vld [vmem:[%s1169_s1 + $0xe8] sm:$0xff]  }
   0x8   :  { %766 = vmatprep.subr.bf16.mxu0 %v869_v8  ;;  %v876_v15 = vld [vmem:[%s1169_s1 + $0x98] sm:$0xff]   ;;  %v880_v19 = vld [vmem:[%s1169_s1 + $0xa0] sm:$0xff]   ;;  %v884_v23 = vld [vmem:[%s1169_s1 + $0xa8] sm:$0xff]  }
   0x9   :  { %787 = vmatpush3.bf16.msra.mxu1 %v868_v7  ;;  %v885_v24 = vld [vmem:[%s1169_s1 + $0x70] sm:$0xff]   ;;  %v889_v29 = vld [vmem:[%s1169_s1 + $0x78] sm:$0xff]   ;;  %v22_v33 = vld [vmem:[%s1168_s0] sm:$0xff] }
   0xa   :  { %788 = vmatprep.subr.bf16.mxu1 %v871_v10  ;;  %v886_v25 = vld [vmem:[%s1169_s1 + $0x30] sm:$0xff]   ;;  %v890_v30 = vld [vmem:[%s1169_s1 + $0x38] sm:$0xff]   ;;  %v893_v37 = vld [vmem:[%s1169_s1 + $0x140] sm:$0xff]   ;;  %v26_v39 = vcombine.high %v22_v33, %v22_v33  ;;  %v33_v41 = vrot.slane %v22_v33, %v32_v40 }
   0xb   :  { %767 = vmatpush3.bf16.msra.mxu0 %v870_v9  ;;  %v887_v26 = vld [vmem:[%s1169_s1 + $0xf0] sm:$0xff]   ;;  %v891_v31 = vld [vmem:[%s1169_s1 + $0xf8] sm:$0xff]   ;;  %v895_v49 = vld [vmem:[%s1169_s1 + $0x100] sm:$0xff]  }
   0xc   :  { %768 = vmatprep.subr.bf16.mxu0 %v873_v12  ;;  %v888_v28 = vld [vmem:[%s1169_s1 + $0xb0] sm:$0xff]   ;;  %v892_v34 = vld [vmem:[%s1169_s1 + $0xb8] sm:$0xff]   ;;  %v40_v42 = vrot.slane %v26_v39, %v32_v40  ;;  %v41_v43 = vcombine.high %v33_v41, %v33_v41  ;;  %v57_v45 = vpack.c.bf16 %v33_v41, %v33_v41  ;;  %v896_v50 = vld [vmem:[%s1169_s1 + $0x148] sm:$0xff]  }
   0xd   :  { %789 = vmatpush3.bf16.msra.mxu1 %v872_v11  ;;  %v897_v51 = vld [vmem:[%s1169_s1 + $0x108] sm:$0xff]   ;;  %v898_v52 = vld [vmem:[%s1169_s1 + $0x150] sm:$0xff]   ;;  %v900_v55 = vld [vmem:[%s1169_s1 + $0x158] sm:$0xff]  }
   0xe   :  { %790 = vmatprep.subr.bf16.mxu1 %v875_v14  ;;  %v42_v44 = vcombine.high %v40_v42, %v40_v42  ;;  %v59_v46 = vpack.c.bf16 %v40_v42, %v40_v42  ;;  %v58_v47 = vpack.c.bf16 %v41_v43, %v41_v43  ;;  %v899_v53 = vld [vmem:[%s1169_s1 + $0x110] sm:$0xff]   ;;  %v703_v54 = vld.sshfl [vmem:[%s1168_s0 + $0x8] sm:$0x33 pattern:$0x76325410]  ;;  %v901_v58 = vld [vmem:[%s1169_s1 + $0x118] sm:$0xff]  }
   0xf   :  { %769 = vmatpush3.bf16.msra.mxu0 %v874_v13  ;;  %v50_v56 = vcombine.high %v703_v54, %v703_v54 }
  0x10   :  { %770 = vmatprep.subr.bf16.mxu0 %v877_v16  ;;  %v60_v48 = vpack.c.bf16 %v42_v44, %v42_v44  ;;  %486 = vmatprep.mubr.bf16.mxu0 %v58_v47 }
  0x11   :  { %791 = vmatpush3.bf16.msra.mxu1 %v876_v15  ;;  %v62_v57 = vpack.c.bf16 %v50_v56, %v50_v56 }
  0x12   :  { %792 = vmatprep.subr.bf16.mxu1 %v879_v18  ;;  %526 = vmatprep.mubr.bf16.mxu1 %v60_v48 }
  0x13   :  { %771 = vmatpush3.bf16.msra.mxu0 %v878_v17 }
  0x14   :  { %772 = vmatprep.subr.bf16.mxu0 %v881_v20 }
  0x15   :  { %793 = vmatpush3.bf16.msra.mxu1 %v880_v19 }
  0x16   :  { %794 = vmatprep.subr.bf16.mxu1 %v883_v22 }
  0x17   :  { %773 = vmatpush3.bf16.msra.mxu0 %v882_v21 }
  0x18   :  { %774 = vmatprep.subr.bf16.mxu0 %v885_v24 }
  0x19   :  { %795 = vmatpush3.bf16.msra.mxu1 %v884_v23 }
  0x1a   :  { %796 = vmatprep.subr.bf16.mxu1 %v887_v26 }
  0x1b   :  { %775 = vmatpush3.bf16.msra.mxu0 %v886_v25 }
  0x1c   :  { %776 = vmatprep.subr.bf16.mxu0 %v889_v29 }
  0x1d   :  { %797 = vmatpush3.bf16.msra.mxu1 %v888_v28 }
  0x1e   :  { %798 = vmatprep.subr.bf16.mxu1 %v891_v31 }
  0x1f   :  { %777 = vmatpush3.bf16.msra.mxu0 %v890_v30 }
  0x20   :  { %806 = vmatprep.subr.bf16.mxu0 %v893_v37 }
  0x21   :  { %799 = vmatpush3.bf16.msra.mxu1 %v892_v34 }
  0x22   :  { %487 = vmatmul.mubr.bf16.vlgmr.msra.gmra.mrb[0].mxu0 %v57_v45 }
  0x23   :  { %807 = vmatpush3.bf16.msra.mxu0 %v895_v49  ;;  %566 = vmatprep.mubr.bf16.mxu0 %v62_v57 }
  0x24   :  { %527 = vmatmul.mubr.bf16.vlgmr.msra.gmra.mrb[0].mxu1 %v59_v46  ;;  %808 = vmatprep.subr.bf16.mxu0 %v896_v50 }
  0x27   :  { %809 = vmatpush3.bf16.msra.mxu0 %v897_v51 }
  0x28   :  { %810 = vmatprep.subr.bf16.mxu0 %v898_v52 }
  0x2b   :  { %811 = vmatpush3.bf16.msra.mxu0 %v899_v53 }
  0x2c   :  { %10 = vsyncpa [#allocation3], 0  ;;  %812 = vmatprep.subr.bf16.mxu0 %v900_v55  ;;  %v902_v59 = vld [vmem:[%s1169_s1 + $0x160] sm:$0xff]   ;;  %v904_v61 = vld [vmem:[%s1169_s1 + $0x168] sm:$0xff]   ;;  %v61_v3 = vpack.c.bf16 %v703_v54, %v703_v54  ;;  %v943_v5 = vmov 0.0   ;;  %vm944_vm0 = vmmov 0  }
  0x2d   :  { %v903_v60 = vld [vmem:[%s1169_s1 + $0x120] sm:$0xff]   ;;  %v905_v62 = vld [vmem:[%s1169_s1 + $0x128] sm:$0xff]   ;;  %v906_v63 = vld [vmem:[%s1169_s1 + $0x170] sm:$0xff]   ;;  %837 = vmatprep.subr.bf16.mxu1 %v943_v5  ;;  %853 = vmatprep.mubr.msk.bf16.mxu1 %vm944_vm0, %v943_v5  ;;  %s945_s8 = smov [#allocation2]   ;;  %vm687_vm1 = vcmask 254976  }
  0x2e   :  { %v907_v0 = vld [vmem:[%s1169_s1 + $0x130] sm:$0xff]   ;;  %v908_v1 = vld [vmem:[%s1169_s1 + $0x178] sm:$0xff]   ;;  %v910_v4 = vld [vmem:[%s1171_s3] sm:$0xff]   ;;  %s695_s9 = sshll.u32 %s945_s8, 4  ;;  %s696_s9 = int_to_ptr.vmem [resolvable:$true] %s695_s9 }
  0x2f   :  { %813 = vmatpush3.bf16.msra.mxu0 %v901_v58  ;;  %v909_v2 = vld [vmem:[%s1169_s1 + $0x138] sm:$0xff]   ;;  %838 = vmatpush3.bf16.msra.mxu1 %v910_v4  ;;  %v911_v6 = vld [vmem:[%s1171_s3 + $0x8] sm:$0xff]   ;;  %v912_v7 = vld [vmem:[%s1171_s3 + $0x10] sm:$0xff]   ;;  %s918_s10 = scalar_lea.vmem %s696_s9, 32  ;;  %p923_p1 = scmp.lt.s32.totalorder %s696_s9, %s696_s9 }
  0x30   :  { %814 = vmatprep.subr.bf16.mxu0 %v902_v59  ;;  %839 = vmatprep.subr.bf16.mxu1 %v943_v5  ;;  %v913_v8 = vld [vmem:[%s1171_s3 + $0x18] sm:$0xff]   ;;  %v914_v9 = vld [vmem:[%s1171_s3 + $0x20] sm:$0xff]   ;;  %v915_v10 = vld [vmem:[%s1171_s3 + $0x28] sm:$0xff]   ;;  %p919_p0 = scmp.ne.s32.totalorder %s696_s9, %s918_s10  ;;  %p924_p2 = scmp.lt.s32.totalorder %s918_s10, %s918_s10 }
  0x31   :  { %v916_v11 = vld [vmem:[%s1171_s3 + $0x30] sm:$0xff]   ;;  %v917_v12 = vld [vmem:[%s1171_s3 + $0x38] sm:$0xff]   ;;  %v704_v15 = vld [vmem:[%s1170_s2] ss:$0 sm:$0xff] }
  0x32   :  { %v753_v34 = vld [vmem:[%s1172_s4] ss:$0 sm:$0xff]  ;;  %p925_p3 = por %p924_p2, %p923_p1 }
  0x33   :  { %815 = vmatpush3.bf16.msra.mxu0 %v903_v60  ;;  %840 = vmatpush3.bf16.msra.mxu1 %v911_v6 }
  0x34   :  { %816 = vmatprep.subr.bf16.mxu0 %v904_v61  ;;  %841 = vmatprep.subr.bf16.mxu1 %v943_v5  ;;  %p926_p4 = pnand %p925_p3, %p919_p0 }
  0x37   :  { %817 = vmatpush3.bf16.msra.mxu0 %v905_v62  ;;  %842 = vmatpush3.bf16.msra.mxu1 %v912_v7 }
  0x38   :  { %818 = vmatprep.subr.bf16.mxu0 %v906_v63  ;;  %843 = vmatprep.subr.bf16.mxu1 %v943_v5 }
  0x3b   :  { %819 = vmatpush3.bf16.msra.mxu0 %v907_v0  ;;  %844 = vmatpush3.bf16.msra.mxu1 %v913_v8 }
  0x3c   :  { %820 = vmatprep.subr.bf16.mxu0 %v908_v1  ;;  %845 = vmatprep.subr.bf16.mxu1 %v943_v5 }
  0x3f   :  { %821 = vmatpush3.bf16.msra.mxu0 %v909_v2  ;;  %846 = vmatpush3.bf16.msra.mxu1 %v914_v9 }
  0x40   :  { %847 = vmatprep.subr.bf16.mxu1 %v943_v5 }
  0x42   :  { %567 = vmatmul.mubr.bf16.vlgmr.msra.gmra.mrb[4].mxu0 %v61_v3 }
  0x43   :  { %848 = vmatpush3.bf16.msra.mxu1 %v915_v10 }
  0x44   :  { %849 = vmatprep.subr.bf16.mxu1 %v943_v5 }
  0x47   :  { %850 = vmatpush3.bf16.msra.mxu1 %v916_v11 }
  0x48   :  { %851 = vmatprep.subr.bf16.mxu1 %v943_v5 }
  0x4b   :  { %852 = vmatpush3.bf16.msra.mxu1 %v917_v12 }
  0xf5   :  { %v778_v13 = vpop.f32.mrb[0].mxu0 }
  0xf6   :  { %v779_v16 = vpop.f32.mrb[1].mxu0 }
  0xf7   :  { %v800_v14 = vpop.f32.mrb[0].mxu1  ;;  %v780_v18 = vadd.f32 %v779_v16, %v778_v13  ;;  %v781_v19 = vpop.f32.mrb[2].mxu0 }
  0xf8   :  { %v801_v17 = vpop.f32.mrb[1].mxu1  ;;  %v782_v22 = vpop.f32.mrb[3].mxu0 }
  0xf9   :  { %v802_v20 = vadd.f32 %v801_v17, %v800_v14  ;;  %v803_v21 = vpop.f32.mrb[2].mxu1  ;;  %v489_v24 = vadd.f32 %v780_v18, %v704_v15 }
  0xfa   :  { %v804_v23 = vpop.f32.mrb[3].mxu1 }
  0xfb   :  { %v529_v25 = vadd.f32 %v802_v20, %v489_v24 }
 0x115   :  { %v822_v26 = vpop.f32.mrb[4].mxu0 }
 0x116   :  { %v823_v27 = vpop.f32.mrb[5].mxu0 }
 0x117   :  { %v824_v28 = vadd.f32 %v823_v27, %v822_v26  ;;  %v825_v29 = vpop.f32.mrb[6].mxu0 }
 0x118   :  { %v826_v30 = vpop.f32.mrb[7].mxu0 }
 0x119   :  { %v569_v31 = vadd.f32 %v824_v28, %v529_v25 }
 0x11b   :  { %v574_v32 = vmax.f32 %v569_v31, 0.0 }
 0x11d   :  { %v575_v33 = vpack.c.bf16 %v574_v32, %v574_v32 }
 0x11f   :  { %854 = vmatmul.mubr.bf16.vlgmr.msra.gmra.mrb[4].mxu1 %v575_v33 }
 0x1f2   :  { %v681_v35 = vpop.f32.mrb[4].mxu1 }
 0x1f3   :  { %v682_v36 = vadd.f32 %v753_v34, %v681_v35  ;;  %v855_v37 = vpop.f32.mrb[5].mxu1 }
 0x1f4   :  { %v684_v38 = vpop.f32.mrb[6].mxu1 }
 0x1f5   :  { %v856_v39 = vpop.f32.mrb[7].mxu1  ;;  %688 = vst.msk [vmem:[#allocation2] sm:$0x3] %vm687_vm1, %v682_v36 }
 0x1f6   :  { %929 = shalt.err (!%p926_p4)
}
 0x1f7   :  { %s930_s4 = scalar_lea.hbm %s1173_s5, 32 }
 0x1f8   :  { %p931_p5 = scmp.ne.s32.totalorder %s1173_s5, %s930_s4  ;;  %p934_p6 = scmp.lt.u32.totalorder %s930_s4, %s1173_s5 }
 0x1fa   :  { %p936_p7 = pnand %p934_p6, %p931_p5 }
 0x1fc   :  { %939 = shalt.err (!%p936_p7)
}
 0x1fd   :  { %698 = dma.vmem_to_hbm [thread:$0]  %s696_s9, 32, %s1173_s5, [#allocation3]  }
 0x1fe   :  { %940 = dma.done.wait [#allocation3], 32  }
 0x1ff   :  { %941 = vsyncadd [#allocation3], 4294967264 }
 0x200   :  { %702 = vsyncpa [#allocation3], 1 }

</bundles_post_ra>
